<compile_context>
chip_gen: v7x
topology: tpu7x:2x2x1
jax: 0.10.0
libtpu: 0.0.40
codegen_flags: <defaults>
</compile_context>

<pallas_src>
import numpy as np
import jax
import jax.numpy as jnp
from jax.experimental import pallas as pl
from jax.experimental.pallas import tpu as pltpu


TILE_B = 256  # lane tile over the batch axis (multiple of 256 for v6e/v7x MXU)


# ----------------------------- Pallas kernel ------------------------------ #

def mdds_kernel(xt_ref, w_ref, b_ref, o_ref):
    # w_ref: (3n, n) fused weight  = -(W2^T) * clamp(theta)   (resident)
    # b_ref: (3n, 1) fused bias    = -b2 (with b2[:n] = -0.5)  (resident)
    # xt_ref: (n, tB) batch tile, one sample per lane
    n = w_ref.shape[1]

    # layer2 + Hadamard + Negation in one MXU push: (3n, tB)
    y = jnp.dot(w_ref[...], xt_ref[...],
                preferred_element_type=jnp.float32) + b_ref[...]

    # MinPool + ReLU.  Sublane slices at multiples of 8 (n % 8 == 0) -> aligned.
    p0 = jnp.maximum(y[:n, :], 0.0)
    p1 = jnp.maximum(jnp.minimum(y[2 * n:, :], y[n:2 * n, :]), 0.0)

    # layer3 folded (constant weights -1 and n): single cross-sublane reduce.
    # Output stays (1, tB): lane-dense, unmasked stores.
    o_ref[...] = jnp.sum(p1 * float(n) - p0, axis=0, keepdims=True)


# ------------------------------- wrappers ---------------------------------- #

def make_fused_params(theta, W2, b2):
    """One-time constant folding (hoisted out of the per-call path).

    theta: (n,)   Hadamard weight (will be clamped to [0, 1]).
    W2:    (n, 3n) layer2 weight.
    b2:    (3n,)   layer2 bias.
    Returns w_fused (3n, n), b_fused (3n, 1).
    """
    n = theta.shape[0]
    theta_c = jnp.clip(jnp.asarray(theta, jnp.float32), 0.0, 1.0)      # clamp FIRST
    b2 = jnp.asarray(b2, jnp.float32).at[:n].set(-0.5)                 # per-call overwrite
    w_fused = (-jnp.asarray(W2, jnp.float32).T) * theta_c[None, :]     # negation + theta fold
    b_fused = (-b2).reshape(3 * n, 1)                                  # negation fold
    return w_fused, b_fused


@jax.jit
def mdds_forward(x_nb, w_fused, b_fused):
    """Batched MDDS forward.

    x_nb:    (n, B) float32 — B independent samples, one per column/lane.
    w_fused: (3n, n), b_fused: (3n, 1) from make_fused_params.
    Returns (B, 1), matching torch's per-sample output shape (1,).
    """
    n3, n = w_fused.shape
    B = x_nb.shape[1]

    # Pad batch to a lane-tile multiple (cheap, keeps stores unmasked).
    pad = (-B) % TILE_B
    if pad:
        x_nb = jnp.pad(x_nb, ((0, 0), (0, pad)))
    Bp = B + pad

    out = pl.pallas_call(
        mdds_kernel,
        out_shape=jax.ShapeDtypeStruct((1, Bp), jnp.float32),
        grid=(Bp // TILE_B,),
        in_specs=[
            pl.BlockSpec((n, TILE_B), lambda i: (0, i)),   # x tile, pipelined
            pl.BlockSpec((n3, n), lambda i: (0, 0)),       # fused W, resident
            pl.BlockSpec((n3, 1), lambda i: (0, 0)),       # fused b, resident
        ],
        out_specs=pl.BlockSpec((1, TILE_B), lambda i: (0, i)),
        compiler_params=pltpu.CompilerParams(
            dimension_semantics=("parallel",)),            # both TCs on v7x
    )(x_nb, w_fused, b_fused)

    out = out[:, :B] if pad else out
    return out.reshape(B, 1)


# ------------------------- parameter construction ------------------------- #

def build_graph_neighbors(n):
    """Deterministic cycle graph on n nodes (stand-in for networkx G)."""
    return {i: [(i - 1) % n, (i + 1) % n] for i in range(n)}


def make_params(n, key):
    nbrs = build_graph_neighbors(n)

    # Hadamard theta weight: uniform in [0, 1) (torch.rand analogue).
    theta = jax.random.uniform(key, (n,), dtype=jnp.float32)

    # layer2 weight: W in R^{n x 3n}; torch stores W.T so Linear computes x @ W + b.
    W = np.zeros((n, 3 * n), dtype=np.float32)
    W[:, :n] = np.eye(n, dtype=np.float32)
    for i in range(n):
        close = [i] + nbrs[i]                                    # close_ngh(i)
        W[close, n + i] = 1.0
        second = sorted({j for f in nbrs[i] for j in nbrs[f] if j != i})
        W[second, 2 * n + i] = 1.0                               # scnd_ngh(i)

    # layer2 bias
    b = np.zeros(3 * n, dtype=np.float32)
    b[:n] = -0.5
    b[n:2 * n] = -1.0
    b[2 * n:] = -2.0

    return theta, jnp.asarray(W), jnp.asarray(b)


def mdds_reference_single(x, theta, W2, b2):
    """Pure-JAX reference of the torch forward pass for one sample."""
    n = x.shape[0]
    b2 = b2.at[:n].set(-0.5)
    h = x * jnp.clip(theta, 0.0, 1.0)
    y = -(h @ W2 + b2)
    pooled = jnp.concatenate([y[:n], jnp.minimum(y[2 * n:], y[n:2 * n])])
    pooled = jnp.maximum(pooled, 0.0)
    w3 = jnp.concatenate([jnp.full((n,), -1.0, jnp.float32),
                          jnp.full((n,), float(n), jnp.float32)])
    return pooled @ w3


# --------------------------------- main ------------------------------------ #

if __name__ == "__main__":
    n = 16    # number of graph nodes
    B = 512   # batched forward passes -> 2 lane tiles of 256

    key = jax.random.PRNGKey(0)
    k_theta, k_x = jax.random.split(key)

    theta, W2, b2 = make_params(n, k_theta)

    # Producer hands x already in (n, B) layout (one sample per lane) so the
    # kernel never needs an HBM transpose of x.
    x_nb = jax.random.uniform(k_x, (n, B), dtype=jnp.float32)

    # One-time constant folding (hoisted out of the per-call path).
    w_fused, b_fused = jax.block_until_ready(make_fused_params(theta, W2, b2))

    out = jax.block_until_ready(mdds_forward(x_nb, w_fused, b_fused))

    ref = jax.vmap(lambda xi: mdds_reference_single(xi, theta, W2, b2))(x_nb.T)
    assert out.shape == (B, 1)
    assert np.allclose(np.asarray(out).reshape(B), np.asarray(ref),
                       rtol=1e-5, atol=1e-5), (
        f"mismatch: kernel={np.asarray(out).reshape(B)[:4]} ref={np.asarray(ref)[:4]}")

    print("KERNEL_OK")
</pallas_src>

<mosaic_0001>
module attributes {stable_mosaic.version = 11 : i64} {
  func.func @mdds_kernel(%arg0: i32, %arg1: memref<16x256xf32, #tpu.memory_space<vmem>>, %arg2: memref<48x16xf32, #tpu.memory_space<vmem>>, %arg3: memref<48x1xf32, #tpu.memory_space<vmem>>, %arg4: memref<1x256xf32, #tpu.memory_space<vmem>>) attributes {dimension_semantics = [#tpu.dimension_semantics<parallel>], iteration_bounds = array<i64: 2>, scalar_prefetch = 0 : i64, scratch_operands = 0 : i64, tpu.core_type = #tpu.core_type<tc>, window_params = [{transform_indices = @transform_0, window_bounds = array<i64: 16, 256>}, {pipeline_mode = #tpu.pipeline_mode<synchronous>, transform_indices = @transform_1, window_bounds = array<i64: 48, 16>}, {pipeline_mode = #tpu.pipeline_mode<synchronous>, transform_indices = @transform_2, window_bounds = array<i64: 48, 1>}, {transform_indices = @transform_3, window_bounds = array<i64: 1, 256>}]} {
    %c0 = arith.constant 0 : index
    %c0_0 = arith.constant 0 : index
    %0 = vector.load %arg2[%c0, %c0_0] : memref<48x16xf32, #tpu.memory_space<vmem>>, vector<48x16xf32>
    %c0_1 = arith.constant 0 : index
    %c0_2 = arith.constant 0 : index
    %1 = vector.load %arg1[%c0_1, %c0_2] : memref<16x256xf32, #tpu.memory_space<vmem>>, vector<16x256xf32>
    %cst = arith.constant dense<0.000000e+00> : vector<48x256xf32>
    %2 = tpu.matmul %0, %1, %cst {dimension_numbers = #tpu.dot_dimension_numbers<[1], [0], [0], [1], [0, 0, 1, 1], [], []>} : vector<48x16xf32>, vector<16x256xf32>, vector<48x256xf32> -> vector<48x256xf32>
    %c0_3 = arith.constant 0 : index
    %c0_4 = arith.constant 0 : index
    %3 = vector.load %arg3[%c0_3, %c0_4] : memref<48x1xf32, #tpu.memory_space<vmem>>, vector<48x1xf32>
    %4 = vector.broadcast %3 : vector<48x1xf32> to vector<48x256xf32>
    %5 = arith.addf %2, %4 : vector<48x256xf32>
    %6 = vector.extract_strided_slice %5 {offsets = [0, 0], sizes = [16, 256], strides = [1, 1]} : vector<48x256xf32> to vector<16x256xf32>
    %cst_5 = arith.constant 0.000000e+00 : f32
    %7 = vector.broadcast %cst_5 : f32 to vector<16x256xf32>
    %8 = arith.maximumf %6, %7 : vector<16x256xf32>
    %9 = vector.extract_strided_slice %5 {offsets = [32, 0], sizes = [16, 256], strides = [1, 1]} : vector<48x256xf32> to vector<16x256xf32>
    %10 = vector.extract_strided_slice %5 {offsets = [16, 0], sizes = [16, 256], strides = [1, 1]} : vector<48x256xf32> to vector<16x256xf32>
    %11 = arith.minimumf %9, %10 : vector<16x256xf32>
    %cst_6 = arith.constant 0.000000e+00 : f32
    %12 = vector.broadcast %cst_6 : f32 to vector<16x256xf32>
    %13 = arith.maximumf %11, %12 : vector<16x256xf32>
    %cst_7 = arith.constant 1.600000e+01 : f32
    %14 = vector.broadcast %cst_7 : f32 to vector<16x256xf32>
    %15 = arith.mulf %13, %14 : vector<16x256xf32>
    %16 = arith.subf %15, %8 : vector<16x256xf32>
    %cst_8 = arith.constant dense<0.000000e+00> : vector<256xf32>
    %17 = vector.multi_reduction <add>, %16, %cst_8 [0] : vector<16x256xf32> to vector<256xf32>
    %18 = vector.shape_cast %17 : vector<256xf32> to vector<1x256xf32>
    %c0_9 = arith.constant 0 : index
    %c0_10 = arith.constant 0 : index
    %19 = vector.load %arg4[%c0_9, %c0_10] : memref<1x256xf32, #tpu.memory_space<vmem>>, vector<1x256xf32>
    tpu.vector_store %arg4[%c0_9, %c0_10], %18 {strides = array<i32>} : memref<1x256xf32, #tpu.memory_space<vmem>>, vector<1x256xf32>,
    return
  }
  func.func @transform_0(%arg0: i32) -> (i32, i32) {
    %c0_i32 = arith.constant 0 : i32
    %c0_i32_0 = arith.constant 0 : i32
    return %c0_i32, %arg0 : i32, i32
  }
  func.func @transform_1(%arg0: i32) -> (i32, i32) {
    %c0_i32 = arith.constant 0 : i32
    %c0_i32_0 = arith.constant 0 : i32
    %c0_i32_1 = arith.constant 0 : i32
    return %c0_i32, %c0_i32_0 : i32, i32
  }
  func.func @transform_2(%arg0: i32) -> (i32, i32) {
    %c0_i32 = arith.constant 0 : i32
    %c0_i32_0 = arith.constant 0 : i32
    %c0_i32_1 = arith.constant 0 : i32
    return %c0_i32, %c0_i32_0 : i32, i32
  }
  func.func @transform_3(%arg0: i32) -> (i32, i32) {
    %c0_i32 = arith.constant 0 : i32
    %c0_i32_0 = arith.constant 0 : i32
    return %c0_i32, %arg0 : i32, i32
  }
}

</mosaic_0001>

<bundles_post_ra>
// kernel: mdds_forward.1
= control target key start
LH: loop header
LB: loop body
LE: loop exit
PB: predicated region body
PF: predicated region fallthrough
CT: control target
= control target key end

     0   :  { %8 = vsyncpa [#allocation4], 0  ;;  %s812_s0 = inlined_call_operand.vmem [shape: f32[16,512], index: 0, kind: input, shape index: {}]   ;;  %s813_s1 = inlined_call_operand.vmem [shape: f32[48,16], index: 1, kind: input, shape index: {}]   ;;  %s814_s2 = inlined_call_operand.vmem [shape: f32[48,1], index: 2, kind: input, shape index: {}]   ;;  %s815_s3 = inlined_call_operand.hbm [shape: f32[1,512], index: 3, kind: output, shape index: {}]  }
   0x1   :  { %10 = vsyncpa [#allocation4 + $0x1], 0  ;;  %s660_s12 = smov 0   ;;  %s662_s13 = smov 0  }
   0x2   :  { %s664_s14 = smov 0   ;;  %s666_s15 = smov 0  }
   0x3 LB: > { %s499_s16 = sadd.s32 4294967295, %s634_s15   ;;  %s500_s17 = sadd.s32 4294967294, %s634_s15   ;;  %s634_s15 = sphi %s666_s15, %s821_s15   ;;  %s630_s14 = sphi %s664_s14, %s820_s14   ;;  %s626_s13 = sphi %s662_s13, %s819_s13   ;;  %s622_s12 = sphi %s660_s12, %s818_s12  }
   0x4   : > { %s683_s18 = sadd.s32 1, %s634_s15   ;;  %s23_s19 = sadd.s32 1, %s630_s14 }
   0x5   : > { %s20_s20 = ssub.s32 %s634_s15, %s683_s18  ;;  %p30_p0 = scmp.ne.s32.totalorder %s630_s14, %s626_s13 }
   0x6   : > { %p21_p1 = scmp.eq.s32.totalorder %s20_s20, 0  ;;  %p31_p2 = scmp.eq.s32.totalorder %s634_s15, 0 }
   0x7   : > { %p102_p3 = scmp.eq.s32.totalorder %s499_s16, 1  ;;  %p107_p4 = scmp.ne.s32.totalorder %s626_s13, %s622_s12 }
   0x8   : > { %s696_s21 = scalar_select %p21_p1, %s630_s14, %s23_s19  }
   0x9   : > { %p32_p5 = por %p31_p2, %p30_p0  ;;  %p698_p6 = por %p102_p3, %p30_p0 }
   0xa   : > { %p108_p7 = scmp.eq.s32.totalorder %s500_s17, 1  ;;  %p502_p9 = scmp.ge.s32.totalorder %s634_s15, 2 }
   0xc   : > { %p702_p8 = por %p108_p7, %p107_p4  ;;  %130 = sbr.rel (%p502_p9) target bundleno = 26 (0x1a), region = 24 }
  0x13   : > { %133 = sbr.rel (!%p32_p5) target bundleno = 26 (0x1a), region = 28  ;;  %s135_s24 = sand.u32 (%p32_p5), 1, %s630_s14  }
  0x14   : > { %s520_s25 = sshll.u32 (%p32_p5), %s634_s15, 4  ;;  %s503_s26 = sshll.u32 (%p32_p5), %s135_s24, 5 }
  0x15   : > { %s140_s29 = scalar_lea.vmem (%p32_p5), %s812_s0, %s520_s25  ;;  %s137_s30 = scalar_lea.vmem (%p32_p5), [#allocation2], %s503_s26 }
  0x16   : > { %v153_v0 = vld [vmem:[%s140_s29] sm:$0xff] (%p32_p5)  ;;  %v155_v1 = vld [vmem:[%s140_s29 + $0x8] sm:$0xff] (%p32_p5) }
  0x17   : > { %v157_v2 = vld [vmem:[%s140_s29 + $0x20] sm:$0xff] (%p32_p5)  ;;  %154 = vst [vmem:[%s137_s30] sm:$0xff] (%p32_p5), %v153_v0  ;;  %156 = vst [vmem:[%s137_s30 + $0x8] sm:$0xff] (%p32_p5), %v155_v1  ;;  %v159_v3 = vld [vmem:[%s140_s29 + $0x28] sm:$0xff] (%p32_p5) }
  0x18   : > { %158 = vst [vmem:[%s137_s30 + $0x10] sm:$0xff] (%p32_p5), %v157_v2  ;;  %160 = vst [vmem:[%s137_s30 + $0x18] sm:$0xff] (%p32_p5), %v159_v3 }
  0x1a PF: > { %p506_p10 = scmp.ge.s32.totalorder %s634_s15, 1  ;;  %p165_p11 = scmp.lt.s32.totalorder %s634_s15, 3 }
  0x1c   : > { %p166_p12 = pnand %p506_p10, %p165_p11 }
  0x1d   : > { %s717_s4 = sand.u32 (!%p166_p12), 1, %s626_s13   ;;  %v636_v4 = vmov (!%p166_p12), 0.0   ;;  %v637_v5 = vmov (!%p166_p12), 0   ;;  %v209_v6 = vld [vmem:[%s814_s2 + $0x10] sm:$0xff] (!%p166_p12)  ;;  %v211_v7 = vld [vmem:[%s814_s2 + $0x20] sm:$0xff] (!%p166_p12)  ;;  %v210_v14 = vld [vmem:[%s814_s2 + $0x18] sm:$0xff] (!%p166_p12) }
  0x1e   : > { %169 = sbr.rel (%p166_p12) target bundleno = 304 (0x130), region = 51  ;;  %s507_s5 = sshll.u32 (!%p166_p12), %s717_s4, 5  ;;  %326 = vmatprep.mubr.f32.mxu0 (!%p166_p12), %v636_v4  ;;  %344 = vmatprep.mubr.f32.mxu1 (!%p166_p12), %v636_v4  ;;  %v212_v15 = vld [vmem:[%s814_s2 + $0x28] sm:$0xff] (!%p166_p12)  ;;  %v197_v16 = vld [vmem:[%s813_s1] sm:$0xff] (!%p166_p12)  ;;  %vm243_vm0 = vcmask (!%p166_p12), 130048   ;;  %v200_v17 = vld [vmem:[%s813_s1 + $0x18] sm:$0xff] (!%p166_p12) }
  0x1f   : > { %570 = vset.pattern.permute.xlu0 (!%p166_p12), %v637_v5  ;;  %571 = vset.pattern.permute.xlu1 (!%p166_p12), %v637_v5  ;;  %s174_s10 = scalar_lea.vmem (!%p166_p12), [#allocation2], %s507_s5  ;;  %v207_v18 = vld [vmem:[%s814_s2] sm:$0xff] (!%p166_p12)  ;;  %v208_v19 = vld [vmem:[%s814_s2 + $0x8] sm:$0xff] (!%p166_p12)  ;;  %v199_v22 = vld [vmem:[%s813_s1 + $0x10] sm:$0xff] (!%p166_p12)  ;;  %s508_s20 = sshll.u32 (!%p166_p12), %s717_s4, 1 }
  0x20   : > { %v204_v8 = vld [vmem:[%s174_s10 + $0x8] sm:$0xff] (!%p166_p12)  ;;  %v206_v9 = vld [vmem:[%s174_s10 + $0x18] sm:$0xff] (!%p166_p12)  ;;  %v203_v10 = vld [vmem:[%s174_s10] sm:$0xff] (!%p166_p12)  ;;  %225 = vperm.xlu0 (!%p166_p12), %570, %v209_v6   ;;  %235 = vperm.xlu1 (!%p166_p12), %571, %v211_v7   ;;  %s521_s24 = sshll.u32 (!%p166_p12), %s499_s16, 5  ;;  %s194_s25 = scalar_lea.vmem (!%p166_p12), [#allocation3], %s508_s20 }
  0x21   : > { %v522_v11 = vpack.c.bf16 (!%p166_p12), %v206_v9, %v204_v8  ;;  %v205_v12 = vld [vmem:[%s174_s10 + $0x10] sm:$0xff] (!%p166_p12)  ;;  %v198_v20 = vld [vmem:[%s813_s1 + $0x8] sm:$0xff] (!%p166_p12)  ;;  %v201_v21 = vld [vmem:[%s813_s1 + $0x20] sm:$0xff] (!%p166_p12)  ;;  %s435_s26 = sshll.u32 (!%p166_p12), %s194_s25, 4  ;;  %s768_s29 = scalar_lea.hbm (!%p166_p12), %s815_s3, %s521_s24  ;;  %s770_s26 = int_to_ptr.vmem [resolvable:$true] %s435_s26 }
  0x22   : > { %v524_v13 = vpack.c.bf16 (!%p166_p12), %v205_v12, %v203_v10  ;;  %v202_v23 = vld [vmem:[%s813_s1 + $0x28] sm:$0xff] (!%p166_p12)  ;;  %s421_s30 = scalar_lea.sflag (!%p166_p12), [#allocation4], %s717_s4  ;;  %s572_s5 = scalar_lea.vmem (!%p166_p12), %s770_s26, 32 }
  0x23   : > { %523 = vmatprep.subr.bf16.mxu0 (!%p166_p12), %v522_v11  ;;  %526 = vmatprep.subr.bf16.mxu1 (!%p166_p12), %v522_v11  ;;  %p573_p13 = scmp.ne.s32.totalorder (!%p166_p12), %s770_s26, %s572_s5  ;;  %s639_s16 = smov (!%p166_p12), [#allocation3]  }
  0x24   : > { %525 = vmatpush1.bf16.msra.mxu0 (!%p166_p12), %v524_v13  ;;  %527 = vmatpush1.bf16.msra.mxu1 (!%p166_p12), %v524_v13  ;;  %s576_s6 = sshll.u32 (!%p166_p12), %s639_s16, 4  ;;  %s577_s6 = int_to_ptr.vmem [resolvable:$false] %s576_s6 }
  0x25   : > { %230 = vperm.xlu0 %570, %v210_v14   ;;  %240 = vperm.xlu1 %571, %v212_v15   ;;  %p574_p0 = pnand %p573_p13, %p698_p6  ;;  %s578_s7 = scalar_lea.vmem %s577_s6, 64 }
  0x26   : > { %p579_p2 = scmp.lt.s32.totalorder %s770_s26, %s577_s6  ;;  %p580_p3 = scmp.lt.s32.totalorder %s578_s7, %s572_s5 }
  0x27   : > { %509 = vmatmul.mubr.msk.f32.vlgmr.msra.gmra.mrb[0].mxu0 %vm243_vm0, %v197_v16  ;;  %512 = vmatmul.mubr.msk.f32.vlgmr.msra.gmra.mrb[0].mxu1 %vm243_vm0, %v200_v17  ;;  %v638_v16 = vmov 1966171168   ;;  %p575_p1 = pneg %p574_p0 }
  0x28   : > { %332 = vmatprep.mubr.f32.mxu0 %v636_v4  ;;  %350 = vmatprep.mubr.f32.mxu1 %v636_v4  ;;  %v401_v17 = vunpack.c.l.s4 %v638_v16  ;;  %p581_p4 = por %p580_p3, %p579_p2 }
  0x29   : > { %215 = vperm.xlu0 %570, %v207_v18   ;;  %220 = vperm.xlu1 %571, %v208_v19   ;;  %v403_v18 = vlaneseq }
  0x2a   : > { %p582_p5 = pnand %p581_p4, %p575_p1 }
  0x2b   : > { %510 = vmatmul.mubr.msk.f32.gmra.mrb[2].mxu0 %vm243_vm0, %v198_v20  ;;  %513 = vmatmul.mubr.msk.f32.gmra.mrb[2].mxu1 %vm243_vm0, %v201_v21  ;;  %vm417_vm1 = vcmp.lt.s32.totalorder %v403_v18, 256 }
  0x2c   : > { %338 = vmatprep.mubr.f32.mxu0 %v636_v4  ;;  %356 = vmatprep.mubr.f32.mxu1 %v636_v4 }
  0x2f   : > { %511 = vmatmul.mubr.msk.f32.gmra.mrb[4].mxu0 %vm243_vm0, %v199_v22  ;;  %514 = vmatmul.mubr.msk.f32.gmra.mrb[4].mxu1 %vm243_vm0, %v202_v23  ;;  %v402_v23 = vunpack.c.0.s8 %v401_v17 }
  0x9f   : > { %v226_v24 = vpop.permute.xlu0 %225  ;;  %v236_v25 = vpop.permute.xlu1 %235 }
  0xa4   : > { %v231_v26 = vpop.permute.xlu0 %230  ;;  %v241_v27 = vpop.permute.xlu1 %240 }
  0xa8   : > { %v216_v36 = vpop.permute.xlu0 %215  ;;  %v221_v37 = vpop.permute.xlu1 %220 }
  0xfa   : > { %v328_v28 = vpop.f32.mrb[0].mxu0  ;;  %v346_v29 = vpop.f32.mrb[0].mxu1 }
  0xfb   : > { %v330_v30 = vpop.f32.mrb[1].mxu0  ;;  %v348_v31 = vpop.f32.mrb[1].mxu1  ;;  %v347_v40 = vadd.f32 %v346_v29, %v231_v26  ;;  %v329_v50 = vadd.f32 %v328_v28, %v216_v36 }
  0xfc   : > { %v349_v46 = vadd.f32 %v348_v31, %v231_v26  ;;  %v331_v54 = vadd.f32 %v330_v30, %v216_v36 }
  0xfd   : > { %v363_v62 = vmax.f32 %v329_v50, 0.0 }
  0xfe   : > { %v334_v32 = vpop.f32.mrb[2].mxu0  ;;  %v352_v33 = vpop.f32.mrb[2].mxu1  ;;  %v364_v2 = vmax.f32 %v331_v54, 0.0 }
  0xff   : > { %v336_v34 = vpop.f32.mrb[3].mxu0  ;;  %v354_v35 = vpop.f32.mrb[3].mxu1  ;;  %v353_v41 = vadd.f32 %v352_v33, %v236_v25  ;;  %v335_v51 = vadd.f32 %v334_v32, %v221_v37 }
 0x100   : > { %v355_v47 = vadd.f32 %v354_v35, %v236_v25  ;;  %v337_v55 = vadd.f32 %v336_v34, %v221_v37 }
 0x101   : > { %v365_v63 = vmax.f32 %v335_v51, 0.0 }
 0x102   : > { %v340_v38 = vpop.f32.mrb[4].mxu0  ;;  %v358_v39 = vpop.f32.mrb[4].mxu1  ;;  %v366_v3 = vmax.f32 %v337_v55, 0.0 }
 0x103   : > { %v341_v42 = vadd.f32 %v340_v38, %v226_v24  ;;  %v359_v43 = vadd.f32 %v358_v39, %v241_v27  ;;  %v342_v44 = vpop.f32.mrb[5].mxu0  ;;  %v360_v45 = vpop.f32.mrb[5].mxu1 }
 0x104   : > { %v343_v48 = vadd.f32 %v342_v44, %v226_v24  ;;  %v361_v49 = vadd.f32 %v360_v45, %v241_v27  ;;  %v404_v24 = vshrl.u32 %v403_v18, 7 }
 0x105   : > { %v367_v52 = vmin.f32 %v353_v41, %v341_v42  ;;  %v369_v53 = vmin.f32 %v359_v43, %v347_v40 }
 0x106   : > { %v368_v56 = vmin.f32 %v355_v47, %v343_v48  ;;  %v370_v57 = vmin.f32 %v361_v49, %v349_v46  ;;  %v405_v29 = vsub.s32 %v402_v23, %v404_v24 }
 0x107   : > { %v371_v58 = vmax.f32 %v367_v52, 0.0  ;;  %v373_v59 = vmax.f32 %v369_v53, 0.0 }
 0x108   : > { %v372_v60 = vmax.f32 %v368_v56, 0.0  ;;  %v374_v61 = vmax.f32 %v370_v57, 0.0 }
 0x109   : > { %v375_v0 = vmul.f32 16.0, %v371_v58  ;;  %v377_v1 = vmul.f32 16.0, %v373_v59 }
 0x10a   : > { %v376_v4 = vmul.f32 16.0, %v372_v60  ;;  %v378_v5 = vmul.f32 16.0, %v374_v61 }
 0x10b   : > { %v379_v6 = vsub.f32 %v375_v0, %v363_v62  ;;  %v381_v7 = vsub.f32 %v377_v1, %v365_v63 }
 0x10c   : > { %v380_v8 = vsub.f32 %v376_v4, %v364_v2  ;;  %v382_v9 = vsub.f32 %v378_v5, %v366_v3 }
 0x10d   : > { %v383_v10 = vadd.f32 %v381_v7, %v379_v6 }
 0x10e   : > { %v390_v11 = vadd.f32 %v382_v9, %v380_v8 }
 0x10f   : > { %v384_v12 = vrot.slane %v383_v10, 4 }
 0x110   : > { %v391_v13 = vrot.slane %v390_v11, 4 }
 0x111   : > { %v385_v14 = vadd.f32 %v384_v12, %v383_v10 }
 0x112   : > { %v392_v15 = vadd.f32 %v391_v13, %v390_v11 }
 0x113   : > { %v386_v19 = vrot.slane %v385_v14, 2 }
 0x114   : > { %v393_v20 = vrot.slane %v392_v15, 2 }
 0x115   : > { %v387_v21 = vadd.f32 %v386_v19, %v385_v14 }
 0x116   : > { %v394_v22 = vadd.f32 %v393_v20, %v392_v15 }
 0x117   : > { %v388_v25 = vrot.slane %v387_v21, 1 }
 0x118   : > { %v395_v26 = vrot.slane %v394_v22, 1 }
 0x119   : > { %v389_v27 = vadd.f32 %v388_v25, %v387_v21 }
 0x11a   : > { %v396_v28 = vadd.f32 %v395_v26, %v394_v22 }
 0x11c   : > { %v399_v30 = vcombine.low %v389_v27, %v396_v28 }
 0x11e   : > { %v406_v31 = vrot.slane %v399_v30, %v405_v29 }
 0x120   : > { %v413_v32 = vrot.slane %v406_v31, %v405_v29 }
 0x122   : > { %419 = vst.msk [vmem:[%s194_s25] sm:$0x3] %vm417_vm1, %v413_v32 }
 0x123   : > { %585 = shalt.err (!%p582_p5)
}
 0x124   : > { %s586_s4 = scalar_lea.hbm %s768_s29, 32  ;;  %s590_s10 = scalar_lea.hbm %s815_s3, 64 }
 0x125   : > { %p587_p7 = scmp.ne.s32.totalorder %s768_s29, %s586_s4  ;;  %p591_p12 = scmp.lt.u32.totalorder %s768_s29, %s815_s3 }
 0x126   : > { %p592_p13 = scmp.lt.u32.totalorder %s590_s10, %s586_s4  ;;  %p594_p1 = scmp.lt.u32.totalorder %s586_s4, %s768_s29 }
 0x127   : > { %p588_p10 = pnand %p587_p7, %p698_p6 }
 0x128   : > { %p593_p0 = por %p592_p13, %p591_p12 }
 0x129   : > { %p589_p11 = pneg %p588_p10 }
 0x12a   : > { %p595_p2 = por %p594_p1, %p593_p0 }
 0x12c   : > { %p596_p3 = pnand %p595_p2, %p589_p11 }
 0x12e   : > { %599 = shalt.err (!%p596_p3)
}
 0x12f   : > { %528 = dma.vmem_to_hbm [thread:$0]  (%p698_p6), %s770_s26, 32, %s768_s29, %s421_s30  }
 0x130 PF: > { %s447_s19 = sand.u32 1, %s622_s12   ;;  %p531_p4 = pnand %p502_p9, %p702_p8 }
 0x131   : > { %s448_s20 = scalar_lea.sflag [#allocation4], %s447_s19 }
 0x132   : > { %617 = dma.done.wait (!%p531_p4), %s448_s20, 32  }
 0x133   : > { %619 = vsyncadd (!%p531_p4), %s448_s20, 4294967264  ;;  %p13_p5 = scmp.ge.s32.totalorder %s683_s18, 4   ;;  %s818_s12 = smov %s626_s13 }
 0x134   : > { %s819_s13 = smov %s630_s14  ;;  %s820_s14 = smov %s696_s21 }
 0x135   : > { %s821_s15 = smov %s683_s18  ;;  %15 = sbr.rel (!%p13_p5) target bundleno = 3 (0x3), region = 95 }
 0x13c   :  { %453 = vsyncpa [#allocation4], 1 }
 0x13d   :  { %455 = vsyncpa [#allocation4 + $0x1], 1 }

</bundles_post_ra>
